<compile_context>
chip_gen: v7x
topology: tpu7x:2x2x1
jax: 0.10.0
libtpu: 0.0.40
codegen_flags: <defaults>
</compile_context>

<pallas_src>
import functools

import jax
import jax.numpy as jnp
from jax import lax
from jax.experimental import pallas as pl
from jax.experimental.pallas import tpu as pltpu


def _round_up(x, m):
    return ((x + m - 1) // m) * m


def _value_mlp_kernel(x_ref, w1_ref, b1_ref, w2_ref, b2_ref, w3_ref, b3_ref, o_ref):
    """One batch tile. x_ref: [TB, S] (caller dtype); weights already in compute dtype.

    o_ref: [1, TB] lane-dense value slab.
    """
    # In-kernel cast of the streamed tile (review: no wrapper astype HBM pass).
    x = x_ref[...].astype(w1_ref.dtype)              # [TB, S]
    # h1[h, b] = sum_s w1[h, s] * x[b, s]  -> batch lands on the 128-lane axis.
    # Both operands contract on their last (lane) dim = native MXU A.B^T pattern, no xpose.
    h1 = lax.dot_general(
        w1_ref[...], x, (((1,), (1,)), ((), ())), preferred_element_type=jnp.float32
    )                                                # [H, TB] f32 accumulation
    h1 = jnp.maximum(h1 + b1_ref[...], 0.0)          # bias + ReLU in f32 (VPU)
    h2 = jnp.dot(
        w2_ref[...], h1.astype(w2_ref.dtype), preferred_element_type=jnp.float32
    )                                                # [H, TB] f32 accumulation
    h2 = jnp.maximum(h2 + b2_ref[...], 0.0)
    # Head (out_features == 1): VPU multiply + sublane reduction (XLU) instead of N=1 MXU.
    out = jnp.sum(h2 * w3_ref[...], axis=0, keepdims=True) + b3_ref[...]   # [1, TB] f32
    o_ref[...] = out.astype(o_ref.dtype)


@functools.partial(jax.jit, static_argnames=("block_b", "compute_dtype"))
def centralized_value_net_forward(state, params, *, block_b=2048, compute_dtype=jnp.bfloat16):
    """state: [B, S]; params: PyTorch-layout dict. Returns [B] float32 values."""
    B, S = state.shape
    H = params["w1"].shape[0]

    # Tile selection:
    #  * B <= 256: single tile, tb == B (block == full array dims, always legal, no padding).
    #  * otherwise: multiple-of-256 tile, capped at round_up(cdiv(B, 2), 256) so there are
    #    always >= 2 tiles for the v7x megacore split. Partial last block is handled by
    #    Pallas (boundary rows are garbage but row-independent and never stored past B).
    if B <= 256:
        tb = B
    else:
        cap = _round_up(pl.cdiv(B, 2), 256)
        tb = max(256, min(_round_up(block_b, 256), cap))
    n_tiles = pl.cdiv(B, tb)

    # Weights are tiny (~25 KB): casting them in the wrapper is negligible and shrinks the
    # VMEM-resident copies. The full state is deliberately NOT cast/padded in the wrapper.
    w1 = params["w1"].astype(compute_dtype)                  # [H, S]
    w2 = params["w2"].astype(compute_dtype)                  # [H, H]
    b1 = params["b1"].reshape(H, 1).astype(jnp.float32)      # broadcast over lanes (batch)
    b2 = params["b2"].reshape(H, 1).astype(jnp.float32)
    w3 = params["w3"].reshape(H, 1).astype(jnp.float32)      # head weight as a column
    b3 = params["b3"].reshape(1, 1).astype(jnp.float32)

    const = lambda i: (0, 0)   # parameters: same block every step -> VMEM-resident
    grid_spec = pltpu.PrefetchScalarGridSpec(
        num_scalar_prefetch=0,
        grid=(n_tiles,),
        in_specs=[
            pl.BlockSpec((tb, S), lambda i: (i, 0)),   # streamed state tile (pipelined DMA)
            pl.BlockSpec((H, S), const),
            pl.BlockSpec((H, 1), const),
            pl.BlockSpec((H, H), const),
            pl.BlockSpec((H, 1), const),
            pl.BlockSpec((H, 1), const),
            pl.BlockSpec((1, 1), const),
        ],
        out_specs=pl.BlockSpec((1, tb), lambda i: (0, i)),   # lane-dense [1, TB] slab
    )

    p_elt = jnp.dtype(compute_dtype).itemsize
    cost = pl.CostEstimate(
        flops=2 * B * (S * H + H * H + H),
        transcendentals=0,
        bytes_accessed=B * S * state.dtype.itemsize         # streamed state (caller dtype)
        + (H * S + H * H) * p_elt + (3 * H + 1) * 4          # resident params
        + B * 4,                                             # output values
    )

    out = pl.pallas_call(
        _value_mlp_kernel,
        out_shape=jax.ShapeDtypeStruct((1, B), jnp.float32),
        grid_spec=grid_spec,
        compiler_params=pltpu.CompilerParams(
            dimension_semantics=("parallel",),       # megacore shards batch tiles on v7x
        ),
        cost_estimate=cost,
    )(state, w1, b1, w2, b2, w3, b3)

    # .view(-1) of the [B, 1] head output.
    return out[0, :]


def reference_forward(state, params, compute_dtype=jnp.float32):
    """Plain-JAX reference mirroring PyTorch Linear semantics (x @ W.T + b)."""
    x = state.astype(compute_dtype)
    w1 = params["w1"].astype(compute_dtype)
    w2 = params["w2"].astype(compute_dtype)
    h1 = jnp.dot(x, w1.T, preferred_element_type=jnp.float32) + params["b1"]
    h1 = jnp.maximum(h1, 0.0)
    h2 = jnp.dot(h1.astype(compute_dtype), w2.T, preferred_element_type=jnp.float32) + params["b2"]
    h2 = jnp.maximum(h2, 0.0)
    out = jnp.dot(h2, params["w3"].T) + params["b3"]
    return out.reshape(-1)


def init_params(key, state_dim, hidden_size=64):
    """Synthetic init with PyTorch Linear parameter shapes ([out, in] weights, [out] biases)."""
    keys = jax.random.split(key, 6)

    def lin(kw, kb, fan_in, fan_out):
        scale = 1.0 / jnp.sqrt(jnp.float32(fan_in))
        w = jax.random.normal(kw, (fan_out, fan_in), jnp.float32) * scale
        b = jax.random.uniform(kb, (fan_out,), jnp.float32, -scale, scale)
        return w, b

    w1, b1 = lin(keys[0], keys[1], state_dim, hidden_size)
    w2, b2 = lin(keys[2], keys[3], hidden_size, hidden_size)
    w3, b3 = lin(keys[4], keys[5], hidden_size, 1)   # head_std=1.0 -> unit-scale head init
    return {"w1": w1, "b1": b1, "w2": w2, "b2": b2, "w3": w3, "b3": b3}


# TODO(synk): the use_cnn=True branch (CNN encoder) is never constructed in this module
# config (use_cnn is hard-coded False), so only the FC path is implemented.

if __name__ == "__main__":
    key = jax.random.PRNGKey(0)
    k_state, k_params, k_big = jax.random.split(key, 3)

    state_dim = 32   # config.state_shape[0]
    hidden = 64      # hidden_size default
    params = init_params(k_params, state_dim, hidden)

    # Small single-tile case (B=8), f32 operand path: tight tolerance vs the reference.
    B = 8
    state = jax.random.normal(k_state, (B, state_dim), jnp.float32)
    values_f32 = centralized_value_net_forward(state, params, compute_dtype=jnp.float32)
    jax.block_until_ready(values_f32)
    ref = reference_forward(state, params)
    assert values_f32.shape == (B,)
    assert jnp.allclose(values_f32, ref, atol=1e-4, rtol=1e-4)

    # Default bf16-operand path (f32 accumulation) on the same input.
    values_bf16 = centralized_value_net_forward(state, params)
    jax.block_until_ready(values_bf16)
    ref_bf16 = reference_forward(state, params, compute_dtype=jnp.bfloat16)
    assert jnp.allclose(values_bf16, ref_bf16, atol=2e-2, rtol=2e-2)

    # Multi-tile case with a partial last block (B=300 -> tiles of 256 + 44): exercises the
    # batch grid, the >=2-tile megacore split, and the no-pad boundary handling.
    B2 = 300
    state2 = jax.random.normal(k_big, (B2, state_dim), jnp.float32)
    v2_f32 = centralized_value_net_forward(state2, params, block_b=256, compute_dtype=jnp.float32)
    jax.block_until_ready(v2_f32)
    ref2 = reference_forward(state2, params)
    assert v2_f32.shape == (B2,)
    assert jnp.allclose(v2_f32, ref2, atol=1e-4, rtol=1e-4)

    # Default settings (block_b=2048, bf16): tb is capped to 256 here so both TCs get a tile.
    v2_bf16 = centralized_value_net_forward(state2, params)
    jax.block_until_ready(v2_bf16)
    ref2_bf16 = reference_forward(state2, params, compute_dtype=jnp.bfloat16)
    assert jnp.allclose(v2_bf16, ref2_bf16, atol=2e-2, rtol=2e-2)

    print("KERNEL_OK")
</pallas_src>

<mosaic_0001>
module attributes {stable_mosaic.version = 11 : i64} {
  func.func @_value_mlp_kernel(%arg0: i32, %arg1: memref<8x32xf32, #tpu.memory_space<vmem>>, %arg2: memref<64x32xf32, #tpu.memory_space<vmem>>, %arg3: memref<64x1xf32, #tpu.memory_space<vmem>>, %arg4: memref<64x64xf32, #tpu.memory_space<vmem>>, %arg5: memref<64x1xf32, #tpu.memory_space<vmem>>, %arg6: memref<64x1xf32, #tpu.memory_space<vmem>>, %arg7: memref<1x1xf32, #tpu.memory_space<vmem>>, %arg8: memref<1x8xf32, #tpu.memory_space<vmem>>) attributes {dimension_semantics = [#tpu.dimension_semantics<parallel>], iteration_bounds = array<i64: 1>, scalar_prefetch = 0 : i64, scratch_operands = 0 : i64, tpu.core_type = #tpu.core_type<tc>, window_params = [{transform_indices = @transform_0, window_bounds = array<i64: 8, 32>}, {pipeline_mode = #tpu.pipeline_mode<synchronous>, transform_indices = @transform_1, window_bounds = array<i64: 64, 32>}, {pipeline_mode = #tpu.pipeline_mode<synchronous>, transform_indices = @transform_2, window_bounds = array<i64: 64, 1>}, {pipeline_mode = #tpu.pipeline_mode<synchronous>, transform_indices = @transform_3, window_bounds = array<i64: 64, 64>}, {pipeline_mode = #tpu.pipeline_mode<synchronous>, transform_indices = @transform_4, window_bounds = array<i64: 64, 1>}, {pipeline_mode = #tpu.pipeline_mode<synchronous>, transform_indices = @transform_5, window_bounds = array<i64: 64, 1>}, {pipeline_mode = #tpu.pipeline_mode<synchronous>, transform_indices = @transform_6, window_bounds = array<i64: 1, 1>}, {transform_indices = @transform_7, window_bounds = array<i64: 1, 8>}]} {
    %c0 = arith.constant 0 : index
    %c0_0 = arith.constant 0 : index
    %0 = vector.load %arg1[%c0, %c0_0] : memref<8x32xf32, #tpu.memory_space<vmem>>, vector<8x32xf32>
    %c0_1 = arith.constant 0 : index
    %c0_2 = arith.constant 0 : index
    %1 = vector.load %arg2[%c0_1, %c0_2] : memref<64x32xf32, #tpu.memory_space<vmem>>, vector<64x32xf32>
    %cst = arith.constant dense<0.000000e+00> : vector<64x8xf32>
    %2 = tpu.matmul %1, %0, %cst {dimension_numbers = #tpu.dot_dimension_numbers<[1], [1], [0], [0], [0, 0, 1, 0], [], []>} : vector<64x32xf32>, vector<8x32xf32>, vector<64x8xf32> -> vector<64x8xf32>
    %c0_3 = arith.constant 0 : index
    %c0_4 = arith.constant 0 : index
    %3 = vector.load %arg3[%c0_3, %c0_4] : memref<64x1xf32, #tpu.memory_space<vmem>>, vector<64x1xf32>
    %4 = vector.broadcast %3 : vector<64x1xf32> to vector<64x8xf32>
    %5 = arith.addf %2, %4 : vector<64x8xf32>
    %cst_5 = arith.constant 0.000000e+00 : f32
    %6 = vector.broadcast %cst_5 : f32 to vector<64x8xf32>
    %7 = arith.maximumf %5, %6 : vector<64x8xf32>
    %c0_6 = arith.constant 0 : index
    %c0_7 = arith.constant 0 : index
    %8 = vector.load %arg4[%c0_6, %c0_7] : memref<64x64xf32, #tpu.memory_space<vmem>>, vector<64x64xf32>
    %cst_8 = arith.constant dense<0.000000e+00> : vector<64x8xf32>
    %9 = tpu.matmul %8, %7, %cst_8 {dimension_numbers = #tpu.dot_dimension_numbers<[1], [0], [0], [1], [0, 0, 1, 1], [], []>} : vector<64x64xf32>, vector<64x8xf32>, vector<64x8xf32> -> vector<64x8xf32>
    %c0_9 = arith.constant 0 : index
    %c0_10 = arith.constant 0 : index
    %10 = vector.load %arg5[%c0_9, %c0_10] : memref<64x1xf32, #tpu.memory_space<vmem>>, vector<64x1xf32>
    %11 = vector.broadcast %10 : vector<64x1xf32> to vector<64x8xf32>
    %12 = arith.addf %9, %11 : vector<64x8xf32>
    %cst_11 = arith.constant 0.000000e+00 : f32
    %13 = vector.broadcast %cst_11 : f32 to vector<64x8xf32>
    %14 = arith.maximumf %12, %13 : vector<64x8xf32>
    %c0_12 = arith.constant 0 : index
    %c0_13 = arith.constant 0 : index
    %15 = vector.load %arg6[%c0_12, %c0_13] : memref<64x1xf32, #tpu.memory_space<vmem>>, vector<64x1xf32>
    %16 = vector.broadcast %15 : vector<64x1xf32> to vector<64x8xf32>
    %17 = arith.mulf %14, %16 : vector<64x8xf32>
    %cst_14 = arith.constant dense<0.000000e+00> : vector<8xf32>
    %18 = vector.multi_reduction <add>, %17, %cst_14 [0] : vector<64x8xf32> to vector<8xf32>
    %19 = vector.shape_cast %18 : vector<8xf32> to vector<1x8xf32>
    %c0_15 = arith.constant 0 : index
    %c0_16 = arith.constant 0 : index
    %20 = vector.load %arg7[%c0_15, %c0_16] : memref<1x1xf32, #tpu.memory_space<vmem>>, vector<1x1xf32>
    %21 = vector.broadcast %20 : vector<1x1xf32> to vector<1x8xf32>
    %22 = arith.addf %19, %21 : vector<1x8xf32>
    %c0_17 = arith.constant 0 : index
    %c0_18 = arith.constant 0 : index
    %23 = vector.load %arg8[%c0_17, %c0_18] : memref<1x8xf32, #tpu.memory_space<vmem>>, vector<1x8xf32>
    tpu.vector_store %arg8[%c0_17, %c0_18], %22 {strides = array<i32>} : memref<1x8xf32, #tpu.memory_space<vmem>>, vector<1x8xf32>,
    return
  }
  func.func @transform_0(%arg0: i32) -> (i32, i32) {
    %c0_i32 = arith.constant 0 : i32
    %c0_i32_0 = arith.constant 0 : i32
    return %arg0, %c0_i32 : i32, i32
  }
  func.func @transform_1(%arg0: i32) -> (i32, i32) {
    %c0_i32 = arith.constant 0 : i32
    %c0_i32_0 = arith.constant 0 : i32
    %c0_i32_1 = arith.constant 0 : i32
    return %c0_i32, %c0_i32_0 : i32, i32
  }
  func.func @transform_2(%arg0: i32) -> (i32, i32) {
    %c0_i32 = arith.constant 0 : i32
    %c0_i32_0 = arith.constant 0 : i32
    %c0_i32_1 = arith.constant 0 : i32
    return %c0_i32, %c0_i32_0 : i32, i32
  }
  func.func @transform_3(%arg0: i32) -> (i32, i32) {
    %c0_i32 = arith.constant 0 : i32
    %c0_i32_0 = arith.constant 0 : i32
    %c0_i32_1 = arith.constant 0 : i32
    return %c0_i32, %c0_i32_0 : i32, i32
  }
  func.func @transform_4(%arg0: i32) -> (i32, i32) {
    %c0_i32 = arith.constant 0 : i32
    %c0_i32_0 = arith.constant 0 : i32
    %c0_i32_1 = arith.constant 0 : i32
    return %c0_i32, %c0_i32_0 : i32, i32
  }
  func.func @transform_5(%arg0: i32) -> (i32, i32) {
    %c0_i32 = arith.constant 0 : i32
    %c0_i32_0 = arith.constant 0 : i32
    %c0_i32_1 = arith.constant 0 : i32
    return %c0_i32, %c0_i32_0 : i32, i32
  }
  func.func @transform_6(%arg0: i32) -> (i32, i32) {
    %c0_i32 = arith.constant 0 : i32
    %c0_i32_0 = arith.constant 0 : i32
    %c0_i32_1 = arith.constant 0 : i32
    return %c0_i32, %c0_i32_0 : i32, i32
  }
  func.func @transform_7(%arg0: i32) -> (i32, i32) {
    %c0_i32 = arith.constant 0 : i32
    %c0_i32_0 = arith.constant 0 : i32
    return %c0_i32, %arg0 : i32, i32
  }
}

</mosaic_0001>

<bundles_post_ra>
// kernel: centralized_value_net_forward.1
= control target key start
LH: loop header
LB: loop body
LE: loop exit
PB: predicated region body
PF: predicated region fallthrough
CT: control target
= control target key end

     0   :  { %s868_s0 = inlined_call_operand.vmem [shape: f32[8,32], index: 0, kind: input, shape index: {}]   ;;  %s869_s1 = inlined_call_operand.vmem [shape: f32[64,32], index: 1, kind: input, shape index: {}]   ;;  %s870_s2 = inlined_call_operand.vmem [shape: f32[64,1], index: 2, kind: input, shape index: {}]   ;;  %s871_s3 = inlined_call_operand.vmem [shape: f32[64,64], index: 3, kind: input, shape index: {}]   ;;  %s872_s4 = inlined_call_operand.vmem [shape: f32[64,1], index: 4, kind: input, shape index: {}]   ;;  %s873_s5 = inlined_call_operand.vmem [shape: f32[64,1], index: 5, kind: input, shape index: {}]   ;;  %s874_s6 = inlined_call_operand.<no memory space> [shape: f32[1,1], index: 6, kind: input, shape index: {}]   ;;  %s875_s7 = inlined_call_operand.hbm [shape: f32[1,8], index: 7, kind: output, shape index: {}]  }
   0x1   :  { %v12_v0 = vstv %s874_s6 }
   0x2   :  { %13 = vst [vmem:[#allocation2] sm:$0x1] %v12_v0 }
   0x3   :  { %v29_v1 = vld [vmem:[%s868_s0] sm:$0xff]  ;;  %vm86_vm0 = vcmask 261120   ;;  %v31_v3 = vld [vmem:[%s869_s1 + $0x8] sm:$0xff]  ;;  %v662_v4 = vmov 0   ;;  %v32_v5 = vld [vmem:[%s869_s1 + $0x10] sm:$0xff] }
   0x4   :  { %v30_v2 = vld [vmem:[%s869_s1] sm:$0xff]  ;;  %568 = vmatprep.subr.msk.mxu0 %vm86_vm0, %v29_v1  ;;  %636 = vset.pattern.permute.xlu0 %v662_v4  ;;  %v40_v7 = vld [vmem:[%s870_s2 + $0x10] sm:$0xff]  ;;  %v39_v8 = vld [vmem:[%s870_s2 + $0x8] sm:$0xff] }
   0x5   :  { %570 = vmatprep.mubr.msk.f32.mxu0 %vm86_vm0, %v30_v2  ;;  %569 = vmatpush3.xpose.msk.msra.mxu0 %vm86_vm0, %v29_v1  ;;  %v38_v6 = vld [vmem:[%s870_s2] sm:$0xff]  ;;  %v41_v9 = vld [vmem:[%s870_s2 + $0x18] sm:$0xff]  ;;  %v43_v13 = vld [vmem:[%s870_s2 + $0x28] sm:$0xff] }
   0x6   :  { %637 = vset.pattern.permute.xlu1 %v662_v4  ;;  %48 = vperm.xlu0 %636, %v38_v6   ;;  %v33_v10 = vld [vmem:[%s869_s1 + $0x18] sm:$0xff]  ;;  %v34_v11 = vld [vmem:[%s869_s1 + $0x20] sm:$0xff]  ;;  %v35_v14 = vld [vmem:[%s869_s1 + $0x28] sm:$0xff] }
   0x7   :  { %58 = vperm.xlu1 %637, %v40_v7   ;;  %v42_v12 = vld [vmem:[%s870_s2 + $0x20] sm:$0xff]  ;;  %v36_v15 = vld [vmem:[%s869_s1 + $0x30] sm:$0xff] }
   0x8   :  { %571 = vmatmul.mubr.msk.f32.vlgmr.msra.gmra.mrb[0].mxu0 %vm86_vm0, %v31_v3 }
   0x9   :  { %573 = vmatprep.mubr.msk.f32.mxu0 %vm86_vm0, %v32_v5 }
   0xa   :  { %53 = vperm.xlu0 %636, %v39_v8  }
   0xb   :  { %63 = vperm.xlu1 %637, %v41_v9  }
   0xc   :  { %574 = vmatmul.mubr.msk.f32.gmra.mrb[2].mxu0 %vm86_vm0, %v33_v10 }
   0xd   :  { %576 = vmatprep.mubr.msk.f32.mxu0 %vm86_vm0, %v34_v11 }
   0xe   :  { %14 = vsyncpa [#allocation4], 0  ;;  %68 = vperm.xlu0 %636, %v42_v12   ;;  %v44_v16 = vld [vmem:[%s870_s2 + $0x30] sm:$0xff]  ;;  %v45_v17 = vld [vmem:[%s870_s2 + $0x38] sm:$0xff]  ;;  %vm283_vm1 = vcmask 523264   ;;  %vm477_vm2 = vcmask 64512  }
   0xf   :  { %73 = vperm.xlu1 %637, %v43_v13   ;;  %v37_v18 = vld [vmem:[%s869_s1 + $0x38] sm:$0xff]  ;;  %v235_v19 = vld [vmem:[%s872_s4] sm:$0xff]  ;;  %v236_v20 = vld [vmem:[%s872_s4 + $0x8] sm:$0xff]  ;;  %vm510_vm3 = vcmask 57344  }
  0x10   :  { %577 = vmatmul.mubr.msk.f32.gmra.mrb[4].mxu0 %vm86_vm0, %v35_v14  ;;  %v237_v21 = vld [vmem:[%s872_s4 + $0x10] sm:$0xff]  ;;  %v238_v22 = vld [vmem:[%s872_s4 + $0x18] sm:$0xff]  ;;  %v421_v23 = vld [vmem:[%s873_s5] sm:$0xff] }
  0x11   :  { %579 = vmatprep.mubr.msk.f32.mxu0 %vm86_vm0, %v36_v15  ;;  %v422_v24 = vld [vmem:[%s873_s5 + $0x8] sm:$0xff]  ;;  %v239_v25 = vld [vmem:[%s872_s4 + $0x20] sm:$0xff]  ;;  %v423_v26 = vld [vmem:[%s873_s5 + $0x10] sm:$0xff] }
  0x12   :  { %78 = vperm.xlu0 %636, %v44_v16   ;;  %v240_v27 = vld [vmem:[%s872_s4 + $0x28] sm:$0xff]  ;;  %v424_v28 = vld [vmem:[%s873_s5 + $0x18] sm:$0xff]  ;;  %v241_v29 = vld [vmem:[%s872_s4 + $0x30] sm:$0xff] }
  0x13   :  { %83 = vperm.xlu1 %637, %v45_v17   ;;  %v425_v30 = vld [vmem:[%s873_s5 + $0x20] sm:$0xff]  ;;  %v242_v31 = vld [vmem:[%s872_s4 + $0x38] sm:$0xff]  ;;  %v426_v32 = vld [vmem:[%s873_s5 + $0x28] sm:$0xff] }
  0x14   :  { %580 = vmatmul.mubr.msk.f32.gmra.mrb[6].mxu0 %vm86_vm0, %v37_v18  ;;  %v427_v33 = vld [vmem:[%s873_s5 + $0x30] sm:$0xff]  ;;  %v428_v34 = vld [vmem:[%s873_s5 + $0x38] sm:$0xff]  ;;  %v499_v35 = vld [vmem:[#allocation2] sm:$0x1] }
  0x15   :  { %v227_v36 = vld [vmem:[%s871_s3] sm:$0xff]  ;;  %v229_v37 = vld [vmem:[%s871_s3 + $0x10] sm:$0xff]  ;;  %v228_v10 = vld [vmem:[%s871_s3 + $0x8] sm:$0xff] }
  0x16   :  { %245 = vperm.xlu0 %636, %v235_v19   ;;  %598 = vmatprep.mubr.msk.f32.mxu0 %vm283_vm1, %v227_v36  ;;  %v230_v11 = vld [vmem:[%s871_s3 + $0x18] sm:$0xff]  ;;  %v231_v12 = vld [vmem:[%s871_s3 + $0x20] sm:$0xff]  ;;  %v232_v13 = vld [vmem:[%s871_s3 + $0x28] sm:$0xff] }
  0x17   :  { %250 = vperm.xlu1 %637, %v236_v20   ;;  %601 = vmatprep.mubr.msk.f32.mxu1 %vm283_vm1, %v229_v37  ;;  %v233_v14 = vld [vmem:[%s871_s3 + $0x30] sm:$0xff]  ;;  %v234_v15 = vld [vmem:[%s871_s3 + $0x38] sm:$0xff]  ;;  %s663_s3 = smov [#allocation3]  }
  0x18   :  { %s518_s27 = sshll.u32 %s663_s3, 4  ;;  %s519_s27 = int_to_ptr.vmem [resolvable:$true] %s518_s27 }
  0x19   :  { %s638_s28 = scalar_lea.vmem %s519_s27, 16  ;;  %s642_s29 = scalar_lea.vmem %s519_s27, 32 }
  0x1a   :  { %255 = vperm.xlu0 %636, %v237_v21   ;;  %p639_p0 = scmp.ne.s32.totalorder %s519_s27, %s638_s28  ;;  %p643_p1 = scmp.lt.s32.totalorder %s519_s27, %s519_s27 }
  0x1b   :  { %260 = vperm.xlu1 %637, %v238_v22   ;;  %p644_p2 = scmp.lt.s32.totalorder %s642_s29, %s638_s28 }
  0x1d   :  { %p645_p3 = por %p644_p2, %p643_p1 }
  0x1e   :  { %431 = vperm.xlu0 %636, %v421_v23  }
  0x1f   :  { %436 = vperm.xlu1 %637, %v422_v24   ;;  %p646_p4 = pnand %p645_p3, %p639_p0 }
  0x22   :  { %265 = vperm.xlu0 %636, %v239_v25  }
  0x23   :  { %441 = vperm.xlu1 %637, %v423_v26  }
  0x26   :  { %270 = vperm.xlu0 %636, %v240_v27  }
  0x27   :  { %446 = vperm.xlu1 %637, %v424_v28  }
  0x2a   :  { %275 = vperm.xlu0 %636, %v241_v29  }
  0x2b   :  { %451 = vperm.xlu1 %637, %v425_v30  }
  0x2e   :  { %280 = vperm.xlu0 %636, %v242_v31  }
  0x2f   :  { %456 = vperm.xlu1 %637, %v426_v32  }
  0x32   :  { %461 = vperm.xlu0 %636, %v427_v33  }
  0x33   :  { %466 = vperm.xlu1 %637, %v428_v34  }
  0x36   :  { %502 = vperm.xlu0 %636, %v499_v35  }
  0x85   :  { %v49_v38 = vpop.permute.xlu0 %48 }
  0x86   :  { %v59_v39 = vpop.permute.xlu1 %58 }
  0x89   :  { %v54_v40 = vpop.permute.xlu0 %53 }
  0x8a   :  { %v64_v41 = vpop.permute.xlu1 %63 }
  0x8d   :  { %v69_v54 = vpop.permute.xlu0 %68 }
  0x8e   :  { %v74_v51 = vpop.permute.xlu1 %73 }
  0x91   :  { %v79_v2 = vpop.permute.xlu0 %78 }
  0x92   :  { %v84_v63 = vpop.permute.xlu1 %83 }
  0x95   :  { %v246_v16 = vpop.permute.xlu0 %245 }
  0x96   :  { %v251_v17 = vpop.permute.xlu1 %250 }
  0x99   :  { %v256_v18 = vpop.permute.xlu0 %255 }
  0x9a   :  { %v261_v19 = vpop.permute.xlu1 %260 }
  0x9d   :  { %v432_v20 = vpop.permute.xlu0 %431 }
  0x9e   :  { %v437_v21 = vpop.permute.xlu1 %436 }
  0xa1   :  { %v266_v22 = vpop.permute.xlu0 %265 }
  0xa2   :  { %v442_v23 = vpop.permute.xlu1 %441 }
  0xa5   :  { %v271_v24 = vpop.permute.xlu0 %270 }
  0xa6   :  { %v447_v25 = vpop.permute.xlu1 %446 }
  0xa9   :  { %v276_v26 = vpop.permute.xlu0 %275 }
  0xaa   :  { %v452_v35 = vpop.permute.xlu1 %451 }
  0xdb   :  { %v572_v42 = vpop.f32.mrb[0].mxu0 }
  0xdc   :  { %v186_v43 = vadd.f32 %v572_v42, %v54_v40  ;;  %v180_v44 = vpop.f32.mrb[1].mxu0 }
  0xdd   :  { %v181_v45 = vadd.f32 %v180_v44, %v49_v38 }
  0xde   :  { %v220_v46 = vmax.f32 %v186_v43, 0.0 }
  0xdf   :  { %v219_v47 = vmax.f32 %v181_v45, 0.0  ;;  %v575_v48 = vpop.f32.mrb[2].mxu0 }
  0xe0   :  { %v196_v49 = vadd.f32 %v575_v48, %v64_v41  ;;  %v190_v50 = vpop.f32.mrb[3].mxu0 }
  0xe1   :  { %v610_v52 = vpack.c.bf16 %v220_v46, %v219_v47  ;;  %v191_v53 = vadd.f32 %v190_v50, %v59_v39  ;;  %v281_v47 = vpop.permute.xlu0 %280 }
  0xe2   :  { %v222_v55 = vmax.f32 %v196_v49, 0.0 }
  0xe3   :  { %v221_v56 = vmax.f32 %v191_v53, 0.0  ;;  %v578_v57 = vpop.f32.mrb[4].mxu0  ;;  %611 = vmatprep.subr.bf16.mxu0 %v610_v52  ;;  %626 = vmatprep.subr.bf16.mxu1 %v610_v52 }
  0xe4   :  { %v206_v58 = vadd.f32 %v578_v57, %v74_v51  ;;  %v200_v59 = vpop.f32.mrb[5].mxu0  ;;  %613 = vmatpush3.bf16.msra.mxu0 %v610_v52  ;;  %630 = vmatpush3.bf16.msra.mxu1 %v610_v52 }
  0xe5   :  { %v614_v60 = vpack.c.bf16 %v222_v55, %v221_v56  ;;  %v201_v61 = vadd.f32 %v200_v59, %v69_v54  ;;  %v457_v54 = vpop.permute.xlu1 %456 }
  0xe6   :  { %v224_v62 = vmax.f32 %v206_v58, 0.0 }
  0xe7   :  { %v223_v0 = vmax.f32 %v201_v61, 0.0  ;;  %v581_v1 = vpop.f32.mrb[6].mxu0  ;;  %615 = vmatprep.subr.bf16.mxu0 %v614_v60  ;;  %627 = vmatprep.subr.bf16.mxu1 %v614_v60 }
  0xe8   :  { %v216_v3 = vadd.f32 %v581_v1, %v84_v63  ;;  %v210_v4 = vpop.f32.mrb[7].mxu0  ;;  %617 = vmatpush3.bf16.msra.mxu0 %v614_v60  ;;  %631 = vmatpush3.bf16.msra.mxu1 %v614_v60 }
  0xe9   :  { %v618_v5 = vpack.c.bf16 %v224_v62, %v223_v0  ;;  %v211_v6 = vadd.f32 %v210_v4, %v79_v2  ;;  %v462_v2 = vpop.permute.xlu0 %461 }
  0xea   :  { %v226_v7 = vmax.f32 %v216_v3, 0.0 }
  0xeb   :  { %v225_v8 = vmax.f32 %v211_v6, 0.0  ;;  %619 = vmatprep.subr.bf16.mxu0 %v618_v5  ;;  %628 = vmatprep.subr.bf16.mxu1 %v618_v5  ;;  %v467_v6 = vpop.permute.xlu1 %466 }
  0xec   :  { %621 = vmatpush3.bf16.msra.mxu0 %v618_v5  ;;  %632 = vmatpush3.bf16.msra.mxu1 %v618_v5 }
  0xed   :  { %v622_v9 = vpack.c.bf16 %v226_v7, %v225_v8 }
  0xef   :  { %623 = vmatprep.subr.bf16.mxu0 %v622_v9  ;;  %629 = vmatprep.subr.bf16.mxu1 %v622_v9 }
  0xf0   :  { %625 = vmatpush3.bf16.msra.mxu0 %v622_v9  ;;  %633 = vmatpush3.bf16.msra.mxu1 %v622_v9 }
  0xf3   :  { %599 = vmatmul.mubr.msk.f32.vlgmr.msra.gmra.mrb[8].mxu0 %vm283_vm1, %v228_v10  ;;  %602 = vmatmul.mubr.msk.f32.vlgmr.msra.gmra.mrb[0].mxu1 %vm283_vm1, %v230_v11 }
  0xf4   :  { %604 = vmatprep.mubr.msk.f32.mxu1 %vm283_vm1, %v231_v12 }
  0xf7   :  { %605 = vmatmul.mubr.msk.f32.gmra.mrb[2].mxu1 %vm283_vm1, %v232_v13 }
  0xf8   :  { %607 = vmatprep.mubr.msk.f32.mxu1 %vm283_vm1, %v233_v14  ;;  %v505_v14 = vlaneseq }
  0xfb   :  { %608 = vmatmul.mubr.msk.f32.gmra.mrb[4].mxu1 %vm283_vm1, %v234_v15 }
 0x1c6   :  { %v600_v27 = vpop.f32.mrb[8].mxu0  ;;  %v603_v28 = vpop.f32.mrb[0].mxu1 }
 0x1c7   :  { %v380_v29 = vadd.f32 %v600_v27, %v251_v17  ;;  %v390_v30 = vadd.f32 %v603_v28, %v261_v19  ;;  %v374_v31 = vpop.f32.mrb[9].mxu0  ;;  %v384_v32 = vpop.f32.mrb[1].mxu1  ;;  %v506_v17 = vshrl.u32 %v505_v14, 7 }
 0x1c8   :  { %v375_v33 = vadd.f32 %v374_v31, %v246_v16  ;;  %v385_v34 = vadd.f32 %v384_v32, %v256_v18 }
 0x1c9   :  { %v414_v36 = vmax.f32 %v380_v29, 0.0  ;;  %v416_v37 = vmax.f32 %v390_v30, 0.0 }
 0x1ca   :  { %v413_v38 = vmax.f32 %v375_v33, 0.0  ;;  %v415_v39 = vmax.f32 %v385_v34, 0.0  ;;  %v606_v40 = vpop.f32.mrb[2].mxu1 }
 0x1cb   :  { %v470_v41 = vmul.f32 %v437_v21, %v414_v36  ;;  %v400_v42 = vadd.f32 %v606_v40, %v271_v24  ;;  %v394_v43 = vpop.f32.mrb[3].mxu1  ;;  %v472_v49 = vmul.f32 %v447_v25, %v416_v37 }
 0x1cc   :  { %v469_v44 = vmul.f32 %v432_v20, %v413_v38  ;;  %v471_v45 = vmul.f32 %v442_v23, %v415_v39  ;;  %v395_v46 = vadd.f32 %v394_v43, %v266_v22  ;;  %v507_v20 = vsub.s32 0, %v506_v17  ;;  %v503_v22 = vpop.permute.xlu0 %502 }
 0x1cd   :  { %v479_v48 = vsel %vm477_vm2, %v470_v41, 0.0  ;;  %v418_v51 = vmax.f32 %v400_v42, 0.0  ;;  %v483_v62 = vsel %vm477_vm2, %v472_v49, 0.0 }
 0x1ce   :  { %v478_v50 = vsel %vm477_vm2, %v469_v44, 0.0  ;;  %v417_v52 = vmax.f32 %v395_v46, 0.0  ;;  %v609_v53 = vpop.f32.mrb[4].mxu1  ;;  %v481_v58 = vsel %vm477_vm2, %v471_v45, 0.0  ;;  %v508_v24 = vrot.slane %v503_v22, %v507_v20 }
 0x1cf   :  { %v480_v55 = vadd.f32 %v479_v48, %v478_v50  ;;  %v410_v56 = vadd.f32 %v609_v53, %v281_v47  ;;  %v404_v57 = vpop.f32.mrb[5].mxu1  ;;  %v474_v63 = vmul.f32 %v457_v54, %v418_v51 }
 0x1d0   :  { %v473_v59 = vmul.f32 %v452_v35, %v417_v52  ;;  %v405_v60 = vadd.f32 %v404_v57, %v276_v26 }
 0x1d1   :  { %v482_v61 = vadd.f32 %v481_v58, %v480_v55  ;;  %v420_v0 = vmax.f32 %v410_v56, 0.0  ;;  %v487_v8 = vsel %vm477_vm2, %v474_v63, 0.0 }
 0x1d2   :  { %v419_v1 = vmax.f32 %v405_v60, 0.0  ;;  %v485_v4 = vsel %vm477_vm2, %v473_v59, 0.0 }
 0x1d3   :  { %v484_v3 = vadd.f32 %v483_v62, %v482_v61  ;;  %v476_v9 = vmul.f32 %v467_v6, %v420_v0 }
 0x1d4   :  { %v475_v5 = vmul.f32 %v462_v2, %v419_v1 }
 0x1d5   :  { %v486_v7 = vadd.f32 %v485_v4, %v484_v3  ;;  %v491_v13 = vsel %vm477_vm2, %v476_v9, 0.0 }
 0x1d6   :  { %v489_v11 = vsel %vm477_vm2, %v475_v5, 0.0 }
 0x1d7   :  { %v488_v10 = vadd.f32 %v487_v8, %v486_v7 }
 0x1d9   :  { %v490_v12 = vadd.f32 %v489_v11, %v488_v10 }
 0x1db   :  { %v492_v15 = vadd.f32 %v491_v13, %v490_v12 }
 0x1dd   :  { %v493_v16 = vrot.slane %v492_v15, 4 }
 0x1df   :  { %v494_v18 = vadd.f32 %v493_v16, %v492_v15 }
 0x1e1   :  { %v495_v19 = vrot.slane %v494_v18, 2 }
 0x1e3   :  { %v496_v21 = vadd.f32 %v495_v19, %v494_v18 }
 0x1e5   :  { %v497_v23 = vrot.slane %v496_v21, 1 }
 0x1e7   :  { %v498_v25 = vadd.f32 %v497_v23, %v496_v21 }
 0x1e9   :  { %v509_v26 = vadd.f32 %v508_v24, %v498_v25 }
 0x1eb   :  { %511 = vst.msk [vmem:[#allocation3] sm:$0x1] %vm510_vm3, %v509_v26 }
 0x1ec   :  { %649 = shalt.err (!%p646_p4)
}
 0x1ed   :  { %s650_s6 = scalar_lea.hbm %s875_s7, 16 }
 0x1ee   :  { %p651_p5 = scmp.ne.s32.totalorder %s875_s7, %s650_s6  ;;  %p654_p6 = scmp.lt.u32.totalorder %s650_s6, %s875_s7 }
 0x1f0   :  { %p656_p7 = pnand %p654_p6, %p651_p5 }
 0x1f2   :  { %659 = shalt.err (!%p656_p7)
}
 0x1f3   :  { %521 = dma.vmem_to_hbm [thread:$0]  %s519_s27, 16, %s875_s7, [#allocation4]  }
 0x1f4   :  { %660 = dma.done.wait [#allocation4], 16  }
 0x1f5   :  { %661 = vsyncadd [#allocation4], 4294967280 }
 0x1f6   :  { %525 = vsyncpa [#allocation4], 1 }

</bundles_post_ra>
